<compile_context>
chip_gen: v7x
topology: tpu7x:2x2x1
jax: 0.10.0
libtpu: 0.0.40
codegen_flags: <defaults>
</compile_context>

<pallas_src>
import functools

import jax
import jax.numpy as jnp
from jax.experimental import pallas as pl
from jax.experimental.pallas import tpu as pltpu


def _round_up(x, m):
    return (x + m - 1) // m * m


def _proj_kernel(p_ref, w_ref, pos_ref, o_ref):
    # p_ref  : (TN, K_pad)   bf16  patch rows for one image tile (row 0 of each
    #                              image is a zero cls placeholder)
    # w_ref  : (K_pad, E_pad) bf16 resident projection weight
    # pos_ref: (TN, E_pad)   f32   fused epilogue table (positions + conv bias,
    #                              cls row folded into row 0)
    # o_ref  : (TN, E_pad)   out_dtype
    acc = jnp.dot(p_ref[...], w_ref[...], preferred_element_type=jnp.float32)
    o_ref[...] = (acc + pos_ref[...]).astype(o_ref.dtype)


@functools.partial(jax.jit, static_argnums=(5,), static_argnames=("out_dtype",))
def patch_embedding(x, conv_w, conv_b, cls_token, positions, patch_size,
                    *, out_dtype=None):
    """ViT PatchEmbedding forward.

    Matches: Conv2d(C, E, kernel=patch, stride=patch) -> 'b e h w -> b (h w) e',
    prepend cls_token, add positions.  Returns (B, N+1, E).

    Notes:
      * Matmul operands are cast to bf16 (f32 accumulation on the MXU), so the
        result matches PyTorch's f32 Conv2d only to ~1e-2.
      * `out_dtype` defaults to x.dtype; passing jnp.bfloat16 halves the
        kernel's HBM writeback on memory-bound chips.
    """
    B, C, H, W = x.shape
    ph, pw = patch_size
    assert H % ph == 0 and W % pw == 0
    Hp, Wp = H // ph, W // pw
    N = Hp * Wp
    N1 = N + 1
    E = conv_w.shape[0]
    K = C * ph * pw
    assert conv_w.shape == (E, C, ph, pw), conv_w.shape
    assert conv_b.shape == (E,), conv_b.shape
    assert cls_token.size == E, cls_token.shape
    assert positions.size == N1 * E, positions.shape
    out_dtype = x.dtype if out_dtype is None else out_dtype

    # ---- im2col in the wrapper: one fused transpose+cast pass over x --------
    # TODO(synk): for large images move this unfold into the kernel (DMA a
    # (C, ph, W) slab of x per grid step and reshuffle in VMEM), or accept x in
    # NHWC and reorder the tiny (E, K) weight instead of transposing x; either
    # removes the full-tensor HBM transpose pass on v6e/v7x.
    patches = x.reshape(B, C, Hp, ph, Wp, pw)
    patches = patches.transpose(0, 2, 4, 1, 3, 5).reshape(B, N, K)
    patches = patches.astype(jnp.bfloat16)

    # ---- lane-dense padded tile sizes ---------------------------------------
    K_pad = _round_up(K, 128)
    E_pad = _round_up(E, 128)
    N1_ceil8 = _round_up(N1, 8)
    # Rows per grid step (sublane multiple).  512 amortizes per-step pipeline
    # overhead; on v5e/v6e (128 MiB VMEM) this could go to 1024 for huge N.
    TN = min(512, N1_ceil8)
    # v7x megacore: ensure the parallel grid has >= 2 steps when possible so
    # both TensorCores get work (matters for B == 1).
    if B * (-(-N1_ceil8 // TN)) < 2 and TN > 8:
        TN = _round_up(-(-N1_ceil8 // 2), 8)
    N1_pad = _round_up(N1, TN)
    NT = N1_pad // TN

    # Row 0 of each image is a zero "cls placeholder" patch: its projection is
    # exactly 0, so the fused position add writes cls_token + positions[0]
    # there directly -- no post-kernel concat.  A single jnp.pad provides the
    # cls row plus the N/K padding (no zeros+set materialization).
    patches_p = jnp.pad(patches, ((0, 0), (1, N1_pad - N1), (0, K_pad - K)))

    w_kxe = conv_w.reshape(E, K).T.astype(jnp.bfloat16)                 # (K, E)
    w_p = jnp.pad(w_kxe, ((0, K_pad - K), (0, E_pad - E)))

    # Fused epilogue table (tiny, kept f32 for accuracy of the final add):
    #   row 0      = positions[0] + cls_token
    #   rows 1..N  = positions[1:] + conv bias
    pos = positions.reshape(N1, E).astype(jnp.float32)
    pos_b = jnp.concatenate(
        [pos[:1] + cls_token.reshape(1, E).astype(jnp.float32),
         pos[1:] + conv_b.reshape(1, E).astype(jnp.float32)],
        axis=0)
    pos_b = jnp.pad(pos_b, ((0, N1_pad - N1), (0, E_pad - E)))

    out = pl.pallas_call(
        _proj_kernel,
        out_shape=jax.ShapeDtypeStruct((B, N1_pad, E_pad), out_dtype),
        grid=(B, NT),
        in_specs=[
            # Patch rows: one image tile per step (leading batch dim squeezed).
            pl.BlockSpec((None, TN, K_pad), lambda b, n: (b, n, 0)),
            # Projection weight: grid-invariant -> DMA'd once, stays resident.
            pl.BlockSpec((K_pad, E_pad), lambda b, n: (0, 0)),
            # Fused position/bias/cls table: depends only on the row tile.
            pl.BlockSpec((TN, E_pad), lambda b, n: (n, 0)),
        ],
        out_specs=pl.BlockSpec((None, TN, E_pad), lambda b, n: (b, n, 0)),
        compiler_params=pltpu.CompilerParams(
            dimension_semantics=("parallel", "parallel"),
        ),
    )(patches_p, w_p, pos_b)

    # Static slice; a no-op when N1 and E are already aligned.
    return out[:, :N1, :E]


def _reference(x, conv_w, conv_b, cls_token, positions, patch_size):
    """Pure-JAX (f32) reference mirroring the PyTorch forward."""
    B, C, H, W = x.shape
    ph, pw = patch_size
    Hp, Wp = H // ph, W // pw
    N = Hp * Wp
    E = conv_w.shape[0]
    patches = x.reshape(B, C, Hp, ph, Wp, pw).transpose(0, 2, 4, 1, 3, 5)
    patches = patches.reshape(B, N, C * ph * pw)
    proj = jnp.einsum("bnk,ek->bne", patches, conv_w.reshape(E, -1)) + conv_b
    cls = jnp.broadcast_to(cls_token.reshape(1, 1, E), (B, 1, E))
    out = jnp.concatenate([cls, proj], axis=1)
    return out + positions.reshape(1, N + 1, E)


if __name__ == "__main__":
    # Small shapes: B=2, C=4, img 16x16, patch 8x8 -> N=4 patches, E=32.
    B, C = 2, 4
    img_size = (16, 16)
    patch_size = (8, 8)
    E = 32
    ph, pw = patch_size
    N = (img_size[0] // ph) * (img_size[1] // pw)

    key = jax.random.PRNGKey(0)
    kx, kw, kb, kc, kp = jax.random.split(key, 5)

    x = jax.random.normal(kx, (B, C, img_size[0], img_size[1]), jnp.float32)
    conv_w = jax.random.normal(kw, (E, C, ph, pw), jnp.float32) * 0.02
    conv_b = jax.random.normal(kb, (E,), jnp.float32) * 0.02
    cls_token = jax.random.normal(kc, (1, 1, E), jnp.float32)
    positions = jax.random.normal(kp, (1, N + 1, E), jnp.float32)

    out = patch_embedding(x, conv_w, conv_b, cls_token, positions, patch_size)
    out = jax.block_until_ready(out)

    ref = _reference(x, conv_w, conv_b, cls_token, positions, patch_size)
    assert out.shape == (B, N + 1, E), out.shape
    assert out.dtype == x.dtype, out.dtype
    # bf16 matmul operands (f32 accumulation) -> slightly looser tolerance.
    assert jnp.allclose(out, ref, atol=1e-2, rtol=1e-2), float(
        jnp.max(jnp.abs(out - ref))
    )
    print("KERNEL_OK")
</pallas_src>

<mosaic_0001>
module attributes {stable_mosaic.version = 11 : i64} {
  func.func @_proj_kernel(%arg0: i32, %arg1: i32, %arg2: memref<1x8x256xbf16, #tpu.memory_space<vmem>>, %arg3: memref<256x128xbf16, #tpu.memory_space<vmem>>, %arg4: memref<8x128xf32, #tpu.memory_space<vmem>>, %arg5: memref<1x8x128xf32, #tpu.memory_space<vmem>>) attributes {dimension_semantics = [#tpu.dimension_semantics<parallel>, #tpu.dimension_semantics<parallel>], iteration_bounds = array<i64: 2, 1>, scalar_prefetch = 0 : i64, scratch_operands = 0 : i64, tpu.core_type = #tpu.core_type<tc>, window_params = [{transform_indices = @transform_0, window_bounds = array<i64: 1, 8, 256>}, {pipeline_mode = #tpu.pipeline_mode<synchronous>, transform_indices = @transform_1, window_bounds = array<i64: 256, 128>}, {transform_indices = @transform_2, window_bounds = array<i64: 8, 128>}, {transform_indices = @transform_3, window_bounds = array<i64: 1, 8, 128>}]} {
    %c0 = arith.constant 0 : index
    %c0_0 = arith.constant 0 : index
    %c0_1 = arith.constant 0 : index
    %0 = vector.load %arg2[%c0, %c0_0, %c0_1] : memref<1x8x256xbf16, #tpu.memory_space<vmem>>, vector<1x8x256xbf16>
    %1 = vector.shape_cast %0 : vector<1x8x256xbf16> to vector<8x256xbf16>
    %c0_2 = arith.constant 0 : index
    %c0_3 = arith.constant 0 : index
    %2 = vector.load %arg3[%c0_2, %c0_3] : memref<256x128xbf16, #tpu.memory_space<vmem>>, vector<256x128xbf16>
    %cst = arith.constant dense<0.000000e+00> : vector<8x128xf32>
    %3 = tpu.matmul %1, %2, %cst {dimension_numbers = #tpu.dot_dimension_numbers<[1], [0], [0], [1], [0, 0, 1, 1], [], []>} : vector<8x256xbf16>, vector<256x128xbf16>, vector<8x128xf32> -> vector<8x128xf32>
    %c0_4 = arith.constant 0 : index
    %c0_5 = arith.constant 0 : index
    %4 = vector.load %arg4[%c0_4, %c0_5] : memref<8x128xf32, #tpu.memory_space<vmem>>, vector<8x128xf32>
    %5 = arith.addf %3, %4 : vector<8x128xf32>
    %c0_6 = arith.constant 0 : index
    %c0_7 = arith.constant 0 : index
    %c0_8 = arith.constant 0 : index
    %6 = vector.load %arg5[%c0_6, %c0_7, %c0_8] : memref<1x8x128xf32, #tpu.memory_space<vmem>>, vector<1x8x128xf32>
    %7 = vector.shape_cast %6 : vector<1x8x128xf32> to vector<8x128xf32>
    %8 = vector.shape_cast %5 : vector<8x128xf32> to vector<1x8x128xf32>
    tpu.vector_store %arg5[%c0_6, %c0_7, %c0_8], %8 {strides = array<i32>} : memref<1x8x128xf32, #tpu.memory_space<vmem>>, vector<1x8x128xf32>,
    return
  }
  func.func @transform_0(%arg0: i32, %arg1: i32) -> (i32, i32, i32) {
    %c0_i32 = arith.constant 0 : i32
    %c0_i32_0 = arith.constant 0 : i32
    return %arg0, %arg1, %c0_i32 : i32, i32, i32
  }
  func.func @transform_1(%arg0: i32, %arg1: i32) -> (i32, i32) {
    %c0_i32 = arith.constant 0 : i32
    %c0_i32_0 = arith.constant 0 : i32
    %c0_i32_1 = arith.constant 0 : i32
    return %c0_i32, %c0_i32_0 : i32, i32
  }
  func.func @transform_2(%arg0: i32, %arg1: i32) -> (i32, i32) {
    %c0_i32 = arith.constant 0 : i32
    %c0_i32_0 = arith.constant 0 : i32
    return %arg1, %c0_i32 : i32, i32
  }
  func.func @transform_3(%arg0: i32, %arg1: i32) -> (i32, i32, i32) {
    %c0_i32 = arith.constant 0 : i32
    %c0_i32_0 = arith.constant 0 : i32
    return %arg0, %arg1, %c0_i32 : i32, i32, i32
  }
}

</mosaic_0001>

<bundles_post_ra>
// kernel: patch_embedding.1
= control target key start
LH: loop header
LB: loop body
LE: loop exit
PB: predicated region body
PF: predicated region fallthrough
CT: control target
= control target key end

     0   :  { %s633_s12 = smov 0   ;;  %s635_s13 = smov 0   ;;  %s724_s0 = inlined_call_operand.vmem [shape: bf16[2,8,256], index: 0, kind: input, shape index: {}]   ;;  %s725_s1 = inlined_call_operand.vmem [shape: bf16[256,128], index: 1, kind: input, shape index: {}]   ;;  %s726_s2 = inlined_call_operand.vmem [shape: f32[8,128], index: 2, kind: input, shape index: {}]   ;;  %s727_s3 = inlined_call_operand.vmem [shape: f32[2,8,128], index: 3, kind: output, shape index: {}]  }
   0x1   :  { %s637_s14 = smov 0  }
   0x2 LB: > { %s25_s15 = sadd.s32 1, %s607_s13  ;;  %p500_p0 = scmp.ge.s32.totalorder %s611_s14, 1  ;;  %s611_s14 = sphi %s637_s14, %s13_s14   ;;  %s607_s13 = sphi %s635_s13, %s729_s13   ;;  %s603_s12 = sphi %s633_s12, %s728_s12  }
   0x3   : > { %p27_p1 = scmp.ge.s32.totalorder %s25_s15, 2  ;;  %p166_p2 = scmp.lt.s32.totalorder %s611_s14, 3 }
   0x5   : > { %s731_s15 = smov (%p27_p1, %s25_s15), 0  ;;  %p167_p3 = pnand %p500_p0, %p166_p2 }
   0x6   : > { %v571_v0 = vld [vmem:[%s725_s1 + $0x40] sm:$0xff] (!%p167_p3)   ;;  %v573_v2 = vld [vmem:[%s725_s1 + $0x48] sm:$0xff] (!%p167_p3)   ;;  %p200_p4 = scmp.lt.s32.totalorder (!%p167_p3), %s603_s12, 1  ;;  %v575_v4 = vld [vmem:[%s725_s1 + $0x50] sm:$0xff] (!%p167_p3)  }
   0x7   : > { %170 = sbr.rel (%p167_p3) target bundleno = 257 (0x101), region = 32  ;;  %v572_v1 = vld [vmem:[%s725_s1] sm:$0xff] (!%p167_p3)   ;;  %525 = vmatprep.subr.bf16.mxu0 (!%p167_p3), %v571_v0  ;;  %v574_v3 = vld [vmem:[%s725_s1 + $0x8] sm:$0xff] (!%p167_p3)   ;;  %v576_v5 = vld [vmem:[%s725_s1 + $0x10] sm:$0xff] (!%p167_p3)  }
   0x8   : > { %526 = vmatpush3.bf16.msra.mxu0 (!%p167_p3), %v572_v1  ;;  %v577_v6 = vld [vmem:[%s725_s1 + $0x58] sm:$0xff] (!%p167_p3)   ;;  %v579_v8 = vld [vmem:[%s725_s1 + $0x60] sm:$0xff] (!%p167_p3)   ;;  %v581_v10 = vld [vmem:[%s725_s1 + $0x68] sm:$0xff] (!%p167_p3)  }
   0x9   : > { %527 = vmatprep.subr.bf16.mxu0 (!%p167_p3), %v573_v2  ;;  %v578_v7 = vld [vmem:[%s725_s1 + $0x18] sm:$0xff] (!%p167_p3)   ;;  %v580_v9 = vld [vmem:[%s725_s1 + $0x20] sm:$0xff] (!%p167_p3)   ;;  %v582_v13 = vld [vmem:[%s725_s1 + $0x28] sm:$0xff] (!%p167_p3)  }
   0xa   : > { %v583_v14 = vld [vmem:[%s725_s1 + $0x70] sm:$0xff] (!%p167_p3)   ;;  %v585_v16 = vld [vmem:[%s725_s1 + $0x78] sm:$0xff] (!%p167_p3)   ;;  %v254_v20 = vld [vmem:[%s726_s2] sm:$0xff] (!%p167_p3) }
   0xb   : > { %v584_v15 = vld [vmem:[%s725_s1 + $0x30] sm:$0xff] (!%p167_p3)   ;;  %v586_v17 = vld [vmem:[%s725_s1 + $0x38] sm:$0xff] (!%p167_p3)  }
   0xc   : > { %528 = vmatpush3.bf16.msra.mxu0 (!%p167_p3), %v574_v3 }
   0xd   : > { %529 = vmatprep.subr.bf16.mxu0 (!%p167_p3), %v575_v4 }
   0xe   : > { %s733_s12 = smov (!%p200_p4, %s603_s12), 1 }
   0xf   : > { %s524_s30 = sshll.u32 %s733_s12, 3 }
  0x10   : > { %530 = vmatpush3.bf16.msra.mxu0 %v576_v5  ;;  %s208_s10 = scalar_lea.vmem %s724_s0, %s524_s30  ;;  %s219_s7 = scalar_lea.vmem %s727_s3, %s524_s30 }
  0x11   : > { %531 = vmatprep.subr.bf16.mxu0 %v577_v6  ;;  %v221_v11 = vld [vmem:[%s208_s10] sm:$0xff] }
  0x12   : > { %v505_v12 = vcombine.high %v221_v11, %v221_v11  ;;  %v504_v18 = vcombine.low %v221_v11, %v221_v11 }
  0x14   : > { %532 = vmatpush3.bf16.msra.mxu0 %v578_v7  ;;  %390 = vmatprep.mubr.bf16.mxu0 %v505_v12 }
  0x15   : > { %533 = vmatprep.subr.bf16.mxu0 %v579_v8 }
  0x18   : > { %534 = vmatpush3.bf16.msra.mxu0 %v580_v9 }
  0x19   : > { %535 = vmatprep.subr.bf16.mxu0 %v581_v10 }
  0x1c   : > { %536 = vmatpush3.bf16.msra.mxu0 %v582_v13 }
  0x1d   : > { %537 = vmatprep.subr.bf16.mxu0 %v583_v14 }
  0x20   : > { %538 = vmatpush3.bf16.msra.mxu0 %v584_v15 }
  0x21   : > { %539 = vmatprep.subr.bf16.mxu0 %v585_v16 }
  0x24   : > { %540 = vmatpush3.bf16.msra.mxu0 %v586_v17 }
  0x27   : > { %391 = vmatmul.mubr.bf16.vlgmr.msra.gmra.mrb[0].mxu0 %v504_v18 }
  0xfa   : > { %v541_v19 = vpop.f32.mrb[0].mxu0 }
  0xfb   : > { %v542_v21 = vpop.f32.mrb[1].mxu0 }
  0xfc   : > { %v543_v22 = vadd.f32 %v542_v21, %v541_v19  ;;  %v544_v23 = vpop.f32.mrb[2].mxu0 }
  0xfd   : > { %v545_v24 = vpop.f32.mrb[3].mxu0 }
  0xfe   : > { %v393_v25 = vadd.f32 %v543_v22, %v254_v20 }
 0x100   : > { %398 = vst [vmem:[%s219_s7] sm:$0xff] %v393_v25 }
 0x101 PF: > { %s13_s14 = sadd.s32 1, %s611_s14   ;;  %s728_s12 = smov %s607_s13 }
 0x102   : > { %p10_p5 = scmp.ge.s32.totalorder %s13_s14, 4   ;;  %s729_s13 = smov %s731_s15 }
 0x104   :  { %12 = sbr.rel (!%p10_p5) target bundleno = 2 (0x2), region = 65 }

</bundles_post_ra>
